<compile_context>
chip_gen: v5e
topology: v5e:2x2
jax: 0.10.0
libtpu: 0.0.40
codegen_flags: <defaults>
</compile_context>

<pallas_src>
import functools

import numpy as np
import jax
import jax.numpy as jnp
from jax.experimental import pallas as pl
from jax.experimental.pallas import tpu as pltpu


# -----------------------------------------------------------------------------
# Pallas kernel: bidirectional LSTM (1 layer) + last-position pooling + linear
# -----------------------------------------------------------------------------
def _bilstm_head_kernel(x_ref,              # [S*B, H]  bf16, time-major, batch-padded
                        wif_ref,            # [H, 4Hl]  bf16  fwd input weights (pre-T)
                        whf_ref,            # [Hl, 4Hl] bf16  fwd recurrent weights (pre-T)
                        bf_ref,             # [1, 4Hl]  f32   fwd bias (b_ih + b_hh)
                        wib_ref,            # [H, 4Hl]  bf16  bwd input weights (pre-T)
                        bb_ref,             # [1, 4Hl]  f32   bwd bias
                        wcf_ref,            # [Hl, Cp]  bf16  classifier (fwd half), lane-padded
                        wcb_ref,            # [Hl, Cp]  bf16  classifier (bwd half), lane-padded
                        bc_ref,             # [1, Cp]   f32   classifier bias, lane-padded
                        out_ref,            # [B, Cp]   f32
                        *, seq_len):
    S = seq_len
    B = out_ref.shape[0]
    Hl = whf_ref.shape[0]

    # ---- Input projection hoisted out of the recurrence ---------------------
    # One streaming MXU matmul + ONE bias broadcast instead of S tiny matmuls
    # and S broadcasts on the serial critical path.
    xw = (jnp.dot(x_ref[...], wif_ref[...],
                  preferred_element_type=jnp.float32)
          + bf_ref[...])                                      # [S*B, 4Hl] f32

    whf = whf_ref[...]

    def activate(gates):
        # Two full-vreg EUP passes over [B, 4Hl]; gate order is PyTorch (i,f,g,o).
        sig = jax.nn.sigmoid(gates)
        tnh = jnp.tanh(gates)
        i = sig[:, 0 * Hl:1 * Hl]
        f = sig[:, 1 * Hl:2 * Hl]
        g = tnh[:, 2 * Hl:3 * Hl]
        o = sig[:, 3 * Hl:4 * Hl]
        return i, f, g, o

    # ---- Forward direction: fully unrolled recurrence (static S) ------------
    h = jnp.zeros((B, Hl), jnp.float32)
    c = jnp.zeros((B, Hl), jnp.float32)
    for t in range(S):                       # static unroll -> static slices
        gates = xw[t * B:(t + 1) * B, :]
        if t > 0:                            # h == 0 at t == 0: skip the matmul
            gates = gates + jnp.dot(h.astype(jnp.bfloat16), whf,
                                    preferred_element_type=jnp.float32)
        i, f, g, o = activate(gates)
        c = f * c + i * g                    # f32 elementwise (v5e-safe)
        h = o * jnp.tanh(c)

    # ---- Backward direction --------------------------------------------------
    # lstm_out[:, -1, Hl:] == backward LSTM's first step on x_{S-1} with zero
    # initial state, so the recurrent matmul and f*c contribute exactly zero.
    gates_b = (jnp.dot(x_ref[(S - 1) * B:S * B, :], wib_ref[...],
                       preferred_element_type=jnp.float32)
               + bb_ref[...])
    i_b, _, g_b, o_b = activate(gates_b)
    h_b = o_b * jnp.tanh(i_b * g_b)

    # ---- Classifier head: split matmul (no concat), lane-dense store --------
    logits = (jnp.dot(h.astype(jnp.bfloat16), wcf_ref[...],
                      preferred_element_type=jnp.float32)
              + jnp.dot(h_b.astype(jnp.bfloat16), wcb_ref[...],
                        preferred_element_type=jnp.float32)
              + bc_ref[...])                                   # [B, Cp]
    out_ref[...] = logits


def bilstm_classifier_head(x_tbh, params, num_classes):
    """x_tbh: [S, B, H] float32 time-major encoder output -> logits [B, num_classes]."""
    S, B, H = x_tbh.shape
    C_pad = params["wcf_t"].shape[1]

    B_pad = max(8, -(-B // 8) * 8)                # sublane-dense batch
    x_pad = jnp.pad(x_tbh, ((0, 0), (0, B_pad - B), (0, 0)))
    x_flat = x_pad.reshape(S * B_pad, H).astype(jnp.bfloat16)

    vmem = pl.BlockSpec(memory_space=pltpu.MemorySpace.VMEM)
    out = pl.pallas_call(
        functools.partial(_bilstm_head_kernel, seq_len=S),
        out_shape=jax.ShapeDtypeStruct((B_pad, C_pad), jnp.float32),
        in_specs=[vmem] * 9,
        out_specs=vmem,
    )(x_flat,
      params["wif_t"], params["whf_t"], params["bf"],
      params["wib_t"], params["bb"],
      params["wcf_t"], params["wcb_t"], params["bc"])
    return out[:B, :num_classes]


# -----------------------------------------------------------------------------
# Parameters (deterministic, PyTorch-style uniform init) in kernel layout
# -----------------------------------------------------------------------------
def init_params(key, vocab_size=50, bert_hidden=32, lstm_hidden=32, num_classes=3,
                c_pad=128):
    ks = jax.random.split(key, 12)
    kl = 1.0 / np.sqrt(lstm_hidden)
    kc = 1.0 / np.sqrt(2 * lstm_hidden)

    def u(k, shape, bound):
        return jax.random.uniform(k, shape, jnp.float32, -bound, bound)

    # Encoder stub (stands in for BERT's last_hidden_state)
    embedding = u(ks[0], (vocab_size, bert_hidden), 0.1)

    # PyTorch LSTM layout: weight_ih_l0 [4Hl, H], weight_hh_l0 [4Hl, Hl], gate order (i,f,g,o)
    w_ih_f = u(ks[1], (4 * lstm_hidden, bert_hidden), kl)
    w_hh_f = u(ks[2], (4 * lstm_hidden, lstm_hidden), kl)
    b_ih_f = u(ks[3], (4 * lstm_hidden,), kl)
    b_hh_f = u(ks[4], (4 * lstm_hidden,), kl)
    w_ih_b = u(ks[5], (4 * lstm_hidden, bert_hidden), kl)
    w_hh_b = u(ks[6], (4 * lstm_hidden, lstm_hidden), kl)
    b_ih_b = u(ks[7], (4 * lstm_hidden,), kl)
    b_hh_b = u(ks[8], (4 * lstm_hidden,), kl)
    # Classifier Linear(2*Hl -> C)
    w_cls = u(ks[9], (num_classes, 2 * lstm_hidden), kc)
    b_cls = u(ks[10], (num_classes,), kc)

    # Kernel-friendly layouts: pre-transposed, biases folded, classifier split
    # into fwd/bwd halves and lane-padded to c_pad; MXU operands cast to bf16
    # (accumulation and elementwise math stay f32 inside the kernel).
    wc_t = w_cls.T                                               # [2Hl, C]
    pad_c = ((0, 0), (0, c_pad - num_classes))
    return {
        "embedding": embedding,
        "wif_t": w_ih_f.T.astype(jnp.bfloat16),                  # [H, 4Hl]
        "whf_t": w_hh_f.T.astype(jnp.bfloat16),                  # [Hl, 4Hl]
        "bf": (b_ih_f + b_hh_f).reshape(1, -1),                  # [1, 4Hl] f32
        "wib_t": w_ih_b.T.astype(jnp.bfloat16),                  # [H, 4Hl]
        "whb_t": w_hh_b.T.astype(jnp.bfloat16),                  # unused: bwd h0 == 0 exactly
        "bb": (b_ih_b + b_hh_b).reshape(1, -1),                  # [1, 4Hl] f32
        "wcf_t": jnp.pad(wc_t[:lstm_hidden], pad_c).astype(jnp.bfloat16),   # [Hl, Cp]
        "wcb_t": jnp.pad(wc_t[lstm_hidden:], pad_c).astype(jnp.bfloat16),   # [Hl, Cp]
        "bc": jnp.pad(b_cls.reshape(1, -1), pad_c),                          # [1, Cp] f32
    }


# -----------------------------------------------------------------------------
# Full forward: encoder stub (glue) + Pallas BiLSTM head
# -----------------------------------------------------------------------------
def tumor_classifier_forward(input_ids, attention_mask, params, num_classes=3):
    # TODO(synk): pretrained BERT encoder has no in-script Pallas equivalent;
    # it is replaced by a deterministic embedding lookup (attention_mask applied
    # multiplicatively here, whereas real BERT uses it inside attention).
    seq = jnp.take(params["embedding"], input_ids, axis=0)          # [B, S, H]
    seq = seq * attention_mask[..., None].astype(seq.dtype)
    x_tbh = jnp.transpose(seq, (1, 0, 2)).astype(jnp.float32)       # [S, B, H] time-major
    return bilstm_classifier_head(x_tbh, params, num_classes)


# -----------------------------------------------------------------------------
# Pure-JAX reference (same math, same bf16 MXU inputs) for a correctness check
# -----------------------------------------------------------------------------
def reference_forward(input_ids, attention_mask, params, num_classes=3):
    seq = jnp.take(params["embedding"], input_ids, axis=0)
    seq = seq * attention_mask[..., None].astype(seq.dtype)
    x = jnp.transpose(seq, (1, 0, 2)).astype(jnp.float32)           # [S, B, H]
    S, B, H = x.shape
    Hl = params["whf_t"].shape[0]
    xb = x.astype(jnp.bfloat16)

    def activate(g):
        sig = jax.nn.sigmoid(g)
        tnh = jnp.tanh(g)
        return (sig[:, :Hl], sig[:, Hl:2 * Hl],
                tnh[:, 2 * Hl:3 * Hl], sig[:, 3 * Hl:])

    xw = (jnp.dot(xb.reshape(S * B, H), params["wif_t"],
                  preferred_element_type=jnp.float32)
          + params["bf"]).reshape(S, B, 4 * Hl)

    h = jnp.zeros((B, Hl), jnp.float32)
    c = jnp.zeros((B, Hl), jnp.float32)
    for t in range(S):
        gates = xw[t]
        if t > 0:
            gates = gates + jnp.dot(h.astype(jnp.bfloat16), params["whf_t"],
                                    preferred_element_type=jnp.float32)
        i, f, g, o = activate(gates)
        c = f * c + i * g
        h = o * jnp.tanh(c)

    gates_b = (jnp.dot(xb[S - 1], params["wib_t"],
                       preferred_element_type=jnp.float32)
               + params["bb"])
    i_b, _, g_b, o_b = activate(gates_b)
    h_b = o_b * jnp.tanh(i_b * g_b)

    logits = (jnp.dot(h.astype(jnp.bfloat16), params["wcf_t"],
                      preferred_element_type=jnp.float32)
              + jnp.dot(h_b.astype(jnp.bfloat16), params["wcb_t"],
                        preferred_element_type=jnp.float32)
              + params["bc"])
    return logits[:, :num_classes]


if __name__ == "__main__":
    B, S = 2, 8
    VOCAB, H_BERT, H_LSTM, N_CLASSES = 50, 32, 32, 3

    key = jax.random.PRNGKey(0)
    k_ids, k_params = jax.random.split(key)

    input_ids = jax.random.randint(k_ids, (B, S), 0, VOCAB, dtype=jnp.int32)
    attention_mask = jnp.ones((B, S), dtype=jnp.int32)

    params = init_params(k_params, VOCAB, H_BERT, H_LSTM, N_CLASSES)

    logits = tumor_classifier_forward(input_ids, attention_mask, params, N_CLASSES)
    logits = jax.block_until_ready(logits)

    ref = reference_forward(input_ids, attention_mask, params, N_CLASSES)
    assert logits.shape == (B, N_CLASSES)
    np.testing.assert_allclose(np.asarray(logits, dtype=np.float32),
                               np.asarray(ref, dtype=np.float32),
                               rtol=1e-4, atol=1e-4)
    print("KERNEL_OK")
</pallas_src>

<mosaic_0001>
module attributes {stable_mosaic.version = 11 : i64} {
  func.func @_bilstm_head_kernel(%arg0: memref<64x32xbf16, #tpu.memory_space<vmem>>, %arg1: memref<32x128xbf16, #tpu.memory_space<vmem>>, %arg2: memref<32x128xbf16, #tpu.memory_space<vmem>>, %arg3: memref<1x128xf32, #tpu.memory_space<vmem>>, %arg4: memref<32x128xbf16, #tpu.memory_space<vmem>>, %arg5: memref<1x128xf32, #tpu.memory_space<vmem>>, %arg6: memref<32x128xbf16, #tpu.memory_space<vmem>>, %arg7: memref<32x128xbf16, #tpu.memory_space<vmem>>, %arg8: memref<1x128xf32, #tpu.memory_space<vmem>>, %arg9: memref<8x128xf32, #tpu.memory_space<vmem>>) attributes {dimension_semantics = [], scalar_prefetch = 0 : i64, scratch_operands = 0 : i64, tpu.core_type = #tpu.core_type<tc>} {
    %c0 = arith.constant 0 : index
    %c0_0 = arith.constant 0 : index
    %0 = vector.load %arg0[%c0, %c0_0] : memref<64x32xbf16, #tpu.memory_space<vmem>>, vector<64x32xbf16>
    %c0_1 = arith.constant 0 : index
    %c0_2 = arith.constant 0 : index
    %1 = vector.load %arg1[%c0_1, %c0_2] : memref<32x128xbf16, #tpu.memory_space<vmem>>, vector<32x128xbf16>
    %cst = arith.constant dense<0.000000e+00> : vector<64x128xf32>
    %2 = tpu.matmul %0, %1, %cst {dimension_numbers = #tpu.dot_dimension_numbers<[1], [0], [0], [1], [0, 0, 1, 1], [], []>} : vector<64x32xbf16>, vector<32x128xbf16>, vector<64x128xf32> -> vector<64x128xf32>
    %c0_3 = arith.constant 0 : index
    %c0_4 = arith.constant 0 : index
    %3 = vector.load %arg3[%c0_3, %c0_4] : memref<1x128xf32, #tpu.memory_space<vmem>>, vector<1x128xf32>
    %4 = vector.broadcast %3 : vector<1x128xf32> to vector<64x128xf32>
    %5 = arith.addf %2, %4 : vector<64x128xf32>
    %c0_5 = arith.constant 0 : index
    %c0_6 = arith.constant 0 : index
    %6 = vector.load %arg2[%c0_5, %c0_6] : memref<32x128xbf16, #tpu.memory_space<vmem>>, vector<32x128xbf16>
    %cst_7 = arith.constant 0.000000e+00 : f32
    %7 = vector.broadcast %cst_7 : f32 to vector<8x32xf32>
    %8 = vector.extract_strided_slice %5 {offsets = [0, 0], sizes = [8, 128], strides = [1, 1]} : vector<64x128xf32> to vector<8x128xf32>
    %9 = arith.negf %8 : vector<8x128xf32>
    %10 = math.exp %9 : vector<8x128xf32>
    %cst_8 = arith.constant 1.000000e+00 : f32
    %11 = vector.broadcast %cst_8 : f32 to vector<8x128xf32>
    %12 = arith.addf %11, %10 : vector<8x128xf32>
    %13 = arith.divf %11, %12 : vector<8x128xf32>
    %14 = math.tanh %8 : vector<8x128xf32>
    %15 = vector.extract_strided_slice %13 {offsets = [0, 0], sizes = [8, 32], strides = [1, 1]} : vector<8x128xf32> to vector<8x32xf32>
    %16 = vector.extract_strided_slice %13 {offsets = [0, 32], sizes = [8, 32], strides = [1, 1]} : vector<8x128xf32> to vector<8x32xf32>
    %17 = vector.extract_strided_slice %14 {offsets = [0, 64], sizes = [8, 32], strides = [1, 1]} : vector<8x128xf32> to vector<8x32xf32>
    %18 = vector.extract_strided_slice %13 {offsets = [0, 96], sizes = [8, 32], strides = [1, 1]} : vector<8x128xf32> to vector<8x32xf32>
    %19 = arith.mulf %16, %7 : vector<8x32xf32>
    %20 = arith.mulf %15, %17 : vector<8x32xf32>
    %21 = arith.addf %19, %20 : vector<8x32xf32>
    %22 = math.tanh %21 : vector<8x32xf32>
    %23 = arith.mulf %18, %22 : vector<8x32xf32>
    %24 = vector.extract_strided_slice %5 {offsets = [8, 0], sizes = [8, 128], strides = [1, 1]} : vector<64x128xf32> to vector<8x128xf32>
    %25 = arith.truncf %23 : vector<8x32xf32> to vector<8x32xbf16>
    %cst_9 = arith.constant dense<0.000000e+00> : vector<8x128xf32>
    %26 = tpu.matmul %25, %6, %cst_9 {dimension_numbers = #tpu.dot_dimension_numbers<[1], [0], [0], [1], [0, 0, 1, 1], [], []>} : vector<8x32xbf16>, vector<32x128xbf16>, vector<8x128xf32> -> vector<8x128xf32>
    %27 = arith.addf %24, %26 : vector<8x128xf32>
    %28 = arith.negf %27 : vector<8x128xf32>
    %29 = math.exp %28 : vector<8x128xf32>
    %cst_10 = arith.constant 1.000000e+00 : f32
    %30 = vector.broadcast %cst_10 : f32 to vector<8x128xf32>
    %31 = arith.addf %30, %29 : vector<8x128xf32>
    %32 = arith.divf %30, %31 : vector<8x128xf32>
    %33 = math.tanh %27 : vector<8x128xf32>
    %34 = vector.extract_strided_slice %32 {offsets = [0, 0], sizes = [8, 32], strides = [1, 1]} : vector<8x128xf32> to vector<8x32xf32>
    %35 = vector.extract_strided_slice %32 {offsets = [0, 32], sizes = [8, 32], strides = [1, 1]} : vector<8x128xf32> to vector<8x32xf32>
    %36 = vector.extract_strided_slice %33 {offsets = [0, 64], sizes = [8, 32], strides = [1, 1]} : vector<8x128xf32> to vector<8x32xf32>
    %37 = vector.extract_strided_slice %32 {offsets = [0, 96], sizes = [8, 32], strides = [1, 1]} : vector<8x128xf32> to vector<8x32xf32>
    %38 = arith.mulf %35, %21 : vector<8x32xf32>
    %39 = arith.mulf %34, %36 : vector<8x32xf32>
    %40 = arith.addf %38, %39 : vector<8x32xf32>
    %41 = math.tanh %40 : vector<8x32xf32>
    %42 = arith.mulf %37, %41 : vector<8x32xf32>
    %43 = vector.extract_strided_slice %5 {offsets = [16, 0], sizes = [8, 128], strides = [1, 1]} : vector<64x128xf32> to vector<8x128xf32>
    %44 = arith.truncf %42 : vector<8x32xf32> to vector<8x32xbf16>
    %cst_11 = arith.constant dense<0.000000e+00> : vector<8x128xf32>
    %45 = tpu.matmul %44, %6, %cst_11 {dimension_numbers = #tpu.dot_dimension_numbers<[1], [0], [0], [1], [0, 0, 1, 1], [], []>} : vector<8x32xbf16>, vector<32x128xbf16>, vector<8x128xf32> -> vector<8x128xf32>
    %46 = arith.addf %43, %45 : vector<8x128xf32>
    %47 = arith.negf %46 : vector<8x128xf32>
    %48 = math.exp %47 : vector<8x128xf32>
    %cst_12 = arith.constant 1.000000e+00 : f32
    %49 = vector.broadcast %cst_12 : f32 to vector<8x128xf32>
    %50 = arith.addf %49, %48 : vector<8x128xf32>
    %51 = arith.divf %49, %50 : vector<8x128xf32>
    %52 = math.tanh %46 : vector<8x128xf32>
    %53 = vector.extract_strided_slice %51 {offsets = [0, 0], sizes = [8, 32], strides = [1, 1]} : vector<8x128xf32> to vector<8x32xf32>
    %54 = vector.extract_strided_slice %51 {offsets = [0, 32], sizes = [8, 32], strides = [1, 1]} : vector<8x128xf32> to vector<8x32xf32>
    %55 = vector.extract_strided_slice %52 {offsets = [0, 64], sizes = [8, 32], strides = [1, 1]} : vector<8x128xf32> to vector<8x32xf32>
    %56 = vector.extract_strided_slice %51 {offsets = [0, 96], sizes = [8, 32], strides = [1, 1]} : vector<8x128xf32> to vector<8x32xf32>
    %57 = arith.mulf %54, %40 : vector<8x32xf32>
    %58 = arith.mulf %53, %55 : vector<8x32xf32>
    %59 = arith.addf %57, %58 : vector<8x32xf32>
    %60 = math.tanh %59 : vector<8x32xf32>
    %61 = arith.mulf %56, %60 : vector<8x32xf32>
    %62 = vector.extract_strided_slice %5 {offsets = [24, 0], sizes = [8, 128], strides = [1, 1]} : vector<64x128xf32> to vector<8x128xf32>
    %63 = arith.truncf %61 : vector<8x32xf32> to vector<8x32xbf16>
    %cst_13 = arith.constant dense<0.000000e+00> : vector<8x128xf32>
    %64 = tpu.matmul %63, %6, %cst_13 {dimension_numbers = #tpu.dot_dimension_numbers<[1], [0], [0], [1], [0, 0, 1, 1], [], []>} : vector<8x32xbf16>, vector<32x128xbf16>, vector<8x128xf32> -> vector<8x128xf32>
    %65 = arith.addf %62, %64 : vector<8x128xf32>
    %66 = arith.negf %65 : vector<8x128xf32>
    %67 = math.exp %66 : vector<8x128xf32>
    %cst_14 = arith.constant 1.000000e+00 : f32
    %68 = vector.broadcast %cst_14 : f32 to vector<8x128xf32>
    %69 = arith.addf %68, %67 : vector<8x128xf32>
    %70 = arith.divf %68, %69 : vector<8x128xf32>
    %71 = math.tanh %65 : vector<8x128xf32>
    %72 = vector.extract_strided_slice %70 {offsets = [0, 0], sizes = [8, 32], strides = [1, 1]} : vector<8x128xf32> to vector<8x32xf32>
    %73 = vector.extract_strided_slice %70 {offsets = [0, 32], sizes = [8, 32], strides = [1, 1]} : vector<8x128xf32> to vector<8x32xf32>
    %74 = vector.extract_strided_slice %71 {offsets = [0, 64], sizes = [8, 32], strides = [1, 1]} : vector<8x128xf32> to vector<8x32xf32>
    %75 = vector.extract_strided_slice %70 {offsets = [0, 96], sizes = [8, 32], strides = [1, 1]} : vector<8x128xf32> to vector<8x32xf32>
    %76 = arith.mulf %73, %59 : vector<8x32xf32>
    %77 = arith.mulf %72, %74 : vector<8x32xf32>
    %78 = arith.addf %76, %77 : vector<8x32xf32>
    %79 = math.tanh %78 : vector<8x32xf32>
    %80 = arith.mulf %75, %79 : vector<8x32xf32>
    %81 = vector.extract_strided_slice %5 {offsets = [32, 0], sizes = [8, 128], strides = [1, 1]} : vector<64x128xf32> to vector<8x128xf32>
    %82 = arith.truncf %80 : vector<8x32xf32> to vector<8x32xbf16>
    %cst_15 = arith.constant dense<0.000000e+00> : vector<8x128xf32>
    %83 = tpu.matmul %82, %6, %cst_15 {dimension_numbers = #tpu.dot_dimension_numbers<[1], [0], [0], [1], [0, 0, 1, 1], [], []>} : vector<8x32xbf16>, vector<32x128xbf16>, vector<8x128xf32> -> vector<8x128xf32>
    %84 = arith.addf %81, %83 : vector<8x128xf32>
    %85 = arith.negf %84 : vector<8x128xf32>
    %86 = math.exp %85 : vector<8x128xf32>
    %cst_16 = arith.constant 1.000000e+00 : f32
    %87 = vector.broadcast %cst_16 : f32 to vector<8x128xf32>
    %88 = arith.addf %87, %86 : vector<8x128xf32>
    %89 = arith.divf %87, %88 : vector<8x128xf32>
    %90 = math.tanh %84 : vector<8x128xf32>
    %91 = vector.extract_strided_slice %89 {offsets = [0, 0], sizes = [8, 32], strides = [1, 1]} : vector<8x128xf32> to vector<8x32xf32>
    %92 = vector.extract_strided_slice %89 {offsets = [0, 32], sizes = [8, 32], strides = [1, 1]} : vector<8x128xf32> to vector<8x32xf32>
    %93 = vector.extract_strided_slice %90 {offsets = [0, 64], sizes = [8, 32], strides = [1, 1]} : vector<8x128xf32> to vector<8x32xf32>
    %94 = vector.extract_strided_slice %89 {offsets = [0, 96], sizes = [8, 32], strides = [1, 1]} : vector<8x128xf32> to vector<8x32xf32>
    %95 = arith.mulf %92, %78 : vector<8x32xf32>
    %96 = arith.mulf %91, %93 : vector<8x32xf32>
    %97 = arith.addf %95, %96 : vector<8x32xf32>
    %98 = math.tanh %97 : vector<8x32xf32>
    %99 = arith.mulf %94, %98 : vector<8x32xf32>
    %100 = vector.extract_strided_slice %5 {offsets = [40, 0], sizes = [8, 128], strides = [1, 1]} : vector<64x128xf32> to vector<8x128xf32>
    %101 = arith.truncf %99 : vector<8x32xf32> to vector<8x32xbf16>
    %cst_17 = arith.constant dense<0.000000e+00> : vector<8x128xf32>
    %102 = tpu.matmul %101, %6, %cst_17 {dimension_numbers = #tpu.dot_dimension_numbers<[1], [0], [0], [1], [0, 0, 1, 1], [], []>} : vector<8x32xbf16>, vector<32x128xbf16>, vector<8x128xf32> -> vector<8x128xf32>
    %103 = arith.addf %100, %102 : vector<8x128xf32>
    %104 = arith.negf %103 : vector<8x128xf32>
    %105 = math.exp %104 : vector<8x128xf32>
    %cst_18 = arith.constant 1.000000e+00 : f32
    %106 = vector.broadcast %cst_18 : f32 to vector<8x128xf32>
    %107 = arith.addf %106, %105 : vector<8x128xf32>
    %108 = arith.divf %106, %107 : vector<8x128xf32>
    %109 = math.tanh %103 : vector<8x128xf32>
    %110 = vector.extract_strided_slice %108 {offsets = [0, 0], sizes = [8, 32], strides = [1, 1]} : vector<8x128xf32> to vector<8x32xf32>
    %111 = vector.extract_strided_slice %108 {offsets = [0, 32], sizes = [8, 32], strides = [1, 1]} : vector<8x128xf32> to vector<8x32xf32>
    %112 = vector.extract_strided_slice %109 {offsets = [0, 64], sizes = [8, 32], strides = [1, 1]} : vector<8x128xf32> to vector<8x32xf32>
    %113 = vector.extract_strided_slice %108 {offsets = [0, 96], sizes = [8, 32], strides = [1, 1]} : vector<8x128xf32> to vector<8x32xf32>
    %114 = arith.mulf %111, %97 : vector<8x32xf32>
    %115 = arith.mulf %110, %112 : vector<8x32xf32>
    %116 = arith.addf %114, %115 : vector<8x32xf32>
    %117 = math.tanh %116 : vector<8x32xf32>
    %118 = arith.mulf %113, %117 : vector<8x32xf32>
    %119 = vector.extract_strided_slice %5 {offsets = [48, 0], sizes = [8, 128], strides = [1, 1]} : vector<64x128xf32> to vector<8x128xf32>
    %120 = arith.truncf %118 : vector<8x32xf32> to vector<8x32xbf16>
    %cst_19 = arith.constant dense<0.000000e+00> : vector<8x128xf32>
    %121 = tpu.matmul %120, %6, %cst_19 {dimension_numbers = #tpu.dot_dimension_numbers<[1], [0], [0], [1], [0, 0, 1, 1], [], []>} : vector<8x32xbf16>, vector<32x128xbf16>, vector<8x128xf32> -> vector<8x128xf32>
    %122 = arith.addf %119, %121 : vector<8x128xf32>
    %123 = arith.negf %122 : vector<8x128xf32>
    %124 = math.exp %123 : vector<8x128xf32>
    %cst_20 = arith.constant 1.000000e+00 : f32
    %125 = vector.broadcast %cst_20 : f32 to vector<8x128xf32>
    %126 = arith.addf %125, %124 : vector<8x128xf32>
    %127 = arith.divf %125, %126 : vector<8x128xf32>
    %128 = math.tanh %122 : vector<8x128xf32>
    %129 = vector.extract_strided_slice %127 {offsets = [0, 0], sizes = [8, 32], strides = [1, 1]} : vector<8x128xf32> to vector<8x32xf32>
    %130 = vector.extract_strided_slice %127 {offsets = [0, 32], sizes = [8, 32], strides = [1, 1]} : vector<8x128xf32> to vector<8x32xf32>
    %131 = vector.extract_strided_slice %128 {offsets = [0, 64], sizes = [8, 32], strides = [1, 1]} : vector<8x128xf32> to vector<8x32xf32>
    %132 = vector.extract_strided_slice %127 {offsets = [0, 96], sizes = [8, 32], strides = [1, 1]} : vector<8x128xf32> to vector<8x32xf32>
    %133 = arith.mulf %130, %116 : vector<8x32xf32>
    %134 = arith.mulf %129, %131 : vector<8x32xf32>
    %135 = arith.addf %133, %134 : vector<8x32xf32>
    %136 = math.tanh %135 : vector<8x32xf32>
    %137 = arith.mulf %132, %136 : vector<8x32xf32>
    %138 = vector.extract_strided_slice %5 {offsets = [56, 0], sizes = [8, 128], strides = [1, 1]} : vector<64x128xf32> to vector<8x128xf32>
    %139 = arith.truncf %137 : vector<8x32xf32> to vector<8x32xbf16>
    %cst_21 = arith.constant dense<0.000000e+00> : vector<8x128xf32>
    %140 = tpu.matmul %139, %6, %cst_21 {dimension_numbers = #tpu.dot_dimension_numbers<[1], [0], [0], [1], [0, 0, 1, 1], [], []>} : vector<8x32xbf16>, vector<32x128xbf16>, vector<8x128xf32> -> vector<8x128xf32>
    %141 = arith.addf %138, %140 : vector<8x128xf32>
    %142 = arith.negf %141 : vector<8x128xf32>
    %143 = math.exp %142 : vector<8x128xf32>
    %cst_22 = arith.constant 1.000000e+00 : f32
    %144 = vector.broadcast %cst_22 : f32 to vector<8x128xf32>
    %145 = arith.addf %144, %143 : vector<8x128xf32>
    %146 = arith.divf %144, %145 : vector<8x128xf32>
    %147 = math.tanh %141 : vector<8x128xf32>
    %148 = vector.extract_strided_slice %146 {offsets = [0, 0], sizes = [8, 32], strides = [1, 1]} : vector<8x128xf32> to vector<8x32xf32>
    %149 = vector.extract_strided_slice %146 {offsets = [0, 32], sizes = [8, 32], strides = [1, 1]} : vector<8x128xf32> to vector<8x32xf32>
    %150 = vector.extract_strided_slice %147 {offsets = [0, 64], sizes = [8, 32], strides = [1, 1]} : vector<8x128xf32> to vector<8x32xf32>
    %151 = vector.extract_strided_slice %146 {offsets = [0, 96], sizes = [8, 32], strides = [1, 1]} : vector<8x128xf32> to vector<8x32xf32>
    %152 = arith.mulf %149, %135 : vector<8x32xf32>
    %153 = arith.mulf %148, %150 : vector<8x32xf32>
    %154 = arith.addf %152, %153 : vector<8x32xf32>
    %155 = math.tanh %154 : vector<8x32xf32>
    %156 = arith.mulf %151, %155 : vector<8x32xf32>
    %c56 = arith.constant 56 : index
    %c0_23 = arith.constant 0 : index
    %157 = vector.load %arg0[%c56, %c0_23] : memref<64x32xbf16, #tpu.memory_space<vmem>>, vector<8x32xbf16>
    %c0_24 = arith.constant 0 : index
    %c0_25 = arith.constant 0 : index
    %158 = vector.load %arg4[%c0_24, %c0_25] : memref<32x128xbf16, #tpu.memory_space<vmem>>, vector<32x128xbf16>
    %cst_26 = arith.constant dense<0.000000e+00> : vector<8x128xf32>
    %159 = tpu.matmul %157, %158, %cst_26 {dimension_numbers = #tpu.dot_dimension_numbers<[1], [0], [0], [1], [0, 0, 1, 1], [], []>} : vector<8x32xbf16>, vector<32x128xbf16>, vector<8x128xf32> -> vector<8x128xf32>
    %c0_27 = arith.constant 0 : index
    %c0_28 = arith.constant 0 : index
    %160 = vector.load %arg5[%c0_27, %c0_28] : memref<1x128xf32, #tpu.memory_space<vmem>>, vector<1x128xf32>
    %161 = vector.broadcast %160 : vector<1x128xf32> to vector<8x128xf32>
    %162 = arith.addf %159, %161 : vector<8x128xf32>
    %163 = arith.negf %162 : vector<8x128xf32>
    %164 = math.exp %163 : vector<8x128xf32>
    %cst_29 = arith.constant 1.000000e+00 : f32
    %165 = vector.broadcast %cst_29 : f32 to vector<8x128xf32>
    %166 = arith.addf %165, %164 : vector<8x128xf32>
    %167 = arith.divf %165, %166 : vector<8x128xf32>
    %168 = math.tanh %162 : vector<8x128xf32>
    %169 = vector.extract_strided_slice %167 {offsets = [0, 0], sizes = [8, 32], strides = [1, 1]} : vector<8x128xf32> to vector<8x32xf32>
    %170 = vector.extract_strided_slice %168 {offsets = [0, 64], sizes = [8, 32], strides = [1, 1]} : vector<8x128xf32> to vector<8x32xf32>
    %171 = vector.extract_strided_slice %167 {offsets = [0, 96], sizes = [8, 32], strides = [1, 1]} : vector<8x128xf32> to vector<8x32xf32>
    %172 = arith.mulf %169, %170 : vector<8x32xf32>
    %173 = math.tanh %172 : vector<8x32xf32>
    %174 = arith.mulf %171, %173 : vector<8x32xf32>
    %175 = arith.truncf %156 : vector<8x32xf32> to vector<8x32xbf16>
    %c0_30 = arith.constant 0 : index
    %c0_31 = arith.constant 0 : index
    %176 = vector.load %arg6[%c0_30, %c0_31] : memref<32x128xbf16, #tpu.memory_space<vmem>>, vector<32x128xbf16>
    %cst_32 = arith.constant dense<0.000000e+00> : vector<8x128xf32>
    %177 = tpu.matmul %175, %176, %cst_32 {dimension_numbers = #tpu.dot_dimension_numbers<[1], [0], [0], [1], [0, 0, 1, 1], [], []>} : vector<8x32xbf16>, vector<32x128xbf16>, vector<8x128xf32> -> vector<8x128xf32>
    %178 = arith.truncf %174 : vector<8x32xf32> to vector<8x32xbf16>
    %c0_33 = arith.constant 0 : index
    %c0_34 = arith.constant 0 : index
    %179 = vector.load %arg7[%c0_33, %c0_34] : memref<32x128xbf16, #tpu.memory_space<vmem>>, vector<32x128xbf16>
    %cst_35 = arith.constant dense<0.000000e+00> : vector<8x128xf32>
    %180 = tpu.matmul %178, %179, %cst_35 {dimension_numbers = #tpu.dot_dimension_numbers<[1], [0], [0], [1], [0, 0, 1, 1], [], []>} : vector<8x32xbf16>, vector<32x128xbf16>, vector<8x128xf32> -> vector<8x128xf32>
    %181 = arith.addf %177, %180 : vector<8x128xf32>
    %c0_36 = arith.constant 0 : index
    %c0_37 = arith.constant 0 : index
    %182 = vector.load %arg8[%c0_36, %c0_37] : memref<1x128xf32, #tpu.memory_space<vmem>>, vector<1x128xf32>
    %183 = vector.broadcast %182 : vector<1x128xf32> to vector<8x128xf32>
    %184 = arith.addf %181, %183 : vector<8x128xf32>
    %c0_38 = arith.constant 0 : index
    %c0_39 = arith.constant 0 : index
    %185 = vector.load %arg9[%c0_38, %c0_39] : memref<8x128xf32, #tpu.memory_space<vmem>>, vector<8x128xf32>
    tpu.vector_store %arg9[%c0_38, %c0_39], %184 {strides = array<i32>} : memref<8x128xf32, #tpu.memory_space<vmem>>, vector<8x128xf32>,
    return
  }
}

</mosaic_0001>

<bundles_post_ra>
// kernel: tpu_custom_call.1
= control target key start
LH: loop header
LB: loop body
LE: loop exit
PB: predicated region body
PF: predicated region fallthrough
CT: control target
= control target key end

     0   :  { %14 = vsyncpa [#allocation3], 0  ;;  %s1205_s0 = inlined_call_operand.vmem [shape: bf16[64,32], index: 0, kind: input, shape index: {}]   ;;  %s1206_s1 = inlined_call_operand.vmem [shape: bf16[32,128], index: 1, kind: input, shape index: {}]   ;;  %s1207_s2 = inlined_call_operand.vmem [shape: bf16[32,128], index: 2, kind: input, shape index: {}]   ;;  %s1208_s3 = inlined_call_operand.vmem [shape: f32[1,128], index: 3, kind: input, shape index: {}]   ;;  %s1209_s4 = inlined_call_operand.vmem [shape: bf16[32,128], index: 4, kind: input, shape index: {}]   ;;  %s1210_s5 = inlined_call_operand.vmem [shape: f32[1,128], index: 5, kind: input, shape index: {}]   ;;  %s1211_s6 = inlined_call_operand.hbm [shape: bf16[32,128], index: 6, kind: input, shape index: {}]   ;;  %s1212_s7 = inlined_call_operand.hbm [shape: bf16[32,128], index: 7, kind: input, shape index: {}]   ;;  %s1213_s8 = inlined_call_operand.vmem [shape: f32[1,128], index: 8, kind: input, shape index: {}]   ;;  %s1214_s9 = inlined_call_operand.hbm [shape: f32[8,128], index: 9, kind: output, shape index: {}]  }
   0x1   :  { %15 = vsyncpa [#allocation6], 0 }
   0x2   :  { %16 = vsyncpa [#allocation4], 0  ;;  %s33_s11 = sshll.u32 %s1211_s6, 4  ;;  %s1031_s12 = smov [#allocation2]   ;;  %s34_s11 = int_to_ptr.hbm [resolvable:$true] %s33_s11 }
   0x3   :  { %s35_s13 = sshll.u32 %s1031_s12, 4  ;;  %s46_s16 = sshll.u32 %s1212_s7, 4  ;;  %s36_s13 = int_to_ptr.vmem [resolvable:$true] %s35_s13  ;;  %s47_s16 = int_to_ptr.hbm [resolvable:$true] %s46_s16 }
   0x4   :  { %s1032_s17 = smov 64   ;;  %s1033_s18 = smov 4  }
   0x5   :  { %41 = dma.hbm_to_vmem [thread:$0]  %s34_s11, 256, %s36_s13, [#allocation3], %s1032_s17, %s1032_s17, %s1033_s18  }
   0x6   :  { %s1034_s19 = smov [#allocation5]  }
   0x7   :  { %s48_s20 = sshll.u32 %s1034_s19, 4  ;;  %s49_s20 = int_to_ptr.vmem [resolvable:$true] %s48_s20 }
   0x8   :  { %54 = dma.hbm_to_vmem [thread:$0]  %s47_s16, 256, %s49_s20, [#allocation6], %s1032_s17, %s1032_s17, %s1033_s18  }
   0x9   :  { %1025 = dma.done.wait [#allocation3], 256  }
   0xa   :  { %1026 = vsyncadd [#allocation3], 4294967040 }
   0xb   :  { %1027 = dma.done.wait [#allocation6], 256  }
   0xc   :  { %1028 = vsyncadd [#allocation6], 4294967040  ;;  %v862_v0 = vld [vmem:[%s1206_s1 + $0x8] sm:$0xff]  ;;  %v861_v1 = vld [vmem:[%s1206_s1] sm:$0xff]  ;;  %vm114_vm0 = vcmask 261120   ;;  %s1035_s1 = smov 32  }
   0xd   :  { %133 = vmatpush.bf16.msra.mxu0 %v862_v0  ;;  %v857_v2 = vld [vmem:[%s1205_s0] sm:$0xff]  ;;  %v864_v26 = vld [vmem:[%s1207_s2 + $0x8] sm:$0xff]  ;;  %s767_s24 = sshll.u32 %s1214_s9, 4  ;;  %s768_s24 = int_to_ptr.hbm [resolvable:$true] %s767_s24 }
   0xe   :  { %v1111_v3 = vld [vmem:[%s1208_s3] ss:$0 sm:$0xff]  ;;  %222 = vmatpush.bf16.msra.mxu1 %v864_v26  ;;  %280 = vmatpush.bf16.msra.mxu2 %v864_v26  ;;  %v858_v57 = vld [vmem:[%s1205_s0 + $0x8] sm:$0xff] }
   0xf   :  { %v863_v27 = vld [vmem:[%s1207_s2] sm:$0xff]  ;;  %338 = vmatpush.bf16.msra.mxu3 %v864_v26 }
  0x11   :  { %134 = vmatpush.bf16.msra.mxu0 %v861_v1 }
  0x12   :  { %223 = vmatpush.bf16.msra.mxu1 %v863_v27  ;;  %281 = vmatpush.bf16.msra.mxu2 %v863_v27 }
  0x13   :  { %339 = vmatpush.bf16.msra.mxu3 %v863_v27 }
  0x14   :  { %802 = vmatmul.msk.bf16.vlgmr.msra.gmra.mxu0 %vm114_vm0, %v857_v2 }
  0x16   :  { %396 = vmatpush.bf16.msrb.mxu1 %v864_v26  ;;  %454 = vmatpush.bf16.msrb.mxu2 %v864_v26 }
  0x17   :  { %512 = vmatpush.bf16.msrb.mxu3 %v864_v26 }
  0x1a   :  { %397 = vmatpush.bf16.msrb.mxu1 %v863_v27  ;;  %455 = vmatpush.bf16.msrb.mxu2 %v863_v27 }
  0x1b   :  { %513 = vmatpush.bf16.msrb.mxu3 %v863_v27 }
  0x24   :  { %803 = vmatmul.msk.bf16.gmra.mxu0 %vm114_vm0, %v858_v57 }
  0x91   :  { %v136_v4 = vpop.f32.mrf.mxu0 }
  0x92   :  { %v137_v5 = vadd.f32 %v1111_v3, %v136_v4 }
  0x94   :  { %881 = vtanh.f32 %v137_v5  ;;  %v806_v7 = vmul.f32 -1.442695, %v137_v5 }
  0x96   :  { %883 = vpow2.f32 %v806_v7 }
  0x99   :  { %v138_v32 = vpop.f32.mrf.mxu0 }
  0x9a   :  { %v882_v6 = vpop.eup %881  ;;  %v139_v33 = vadd.f32 %v1111_v3, %v138_v32 }
  0x9b   :  { %182 = vrot.lane.b32.xlu0 %v882_v6, %s1032_s17 }
  0x9c   :  { %v884_v8 = vpop.eup %883 }
  0x9d   :  { %v163_v9 = vadd.f32 1.0, %v884_v8 }
  0x9f   :  { %885 = vrcp.f32 %v163_v9  ;;  %v175_v15 = vand.u32 2147483648, %v163_v9  ;;  %vm169_vm2 = vweird.f32 %v163_v9  ;;  %v173_v16 = vand.u32 2147483647, %v163_v9 }
  0xa1   :  { %v176_v18 = vor.u32 1.1754944e-38, %v175_v15  ;;  %vm174_vm4 = vcmp.eq.f32.partialorder %v173_v16, 8.507059e+37  ;;  %v141_v62 = vpop.f32.mrf.mxu0 }
  0xa2   :  { %v142_v63 = vadd.f32 %v1111_v3, %v141_v62 }
  0xa5   :  { %v886_v10 = vpop.eup %885 }
  0xa6   :  { %v165_v11 = vmul.f32 %v886_v10, %v163_v9  ;;  %vm170_vm1 = vweird.f32 %v886_v10 }
  0xa7   :  { %vm171_vm3 = vmor %vm169_vm2, %vm170_vm1 }
  0xa8   :  { %v166_v12 = vsub.f32 1.0, %v165_v11 }
  0xaa   :  { %v167_v13 = vmul.f32 %v886_v10, %v166_v12 }
  0xac   :  { %v168_v14 = vadd.f32 %v886_v10, %v167_v13 }
  0xae   :  { %v172_v17 = vsel %vm171_vm3, %v886_v10, %v168_v14 }
  0xaf   :  { %v177_v20 = vsel %vm174_vm4, %v176_v18, %v172_v17 }
  0xb0   :  { %v180_v22 = vmul.f32 0.0, %v177_v20 }
 0x10d   :  { %v183_v19 = vpop.permute.xlu0 %182 }
 0x10e   :  { %v185_v21 = vmul.f32 %v183_v19, %v177_v20 }
 0x110   :  { %187 = vrot.lane.b32.xlu0 %v185_v21, %s1035_s1 }
 0x182   :  { %v188_v23 = vpop.permute.xlu0 %187 }
 0x183   :  { %v190_v24 = vadd.f32 %v188_v23, %v180_v22 }
 0x185   :  { %887 = vtanh.f32 %v190_v24 }
 0x18b   :  { %v888_v25 = vpop.eup %887 }
 0x18c   :  { %193 = vrot.lane.b32.xlu1 %v888_v25, %s1032_s17 }
 0x1fe   :  { %v194_v28 = vpop.permute.xlu1 %193 }
 0x1ff   :  { %v196_v29 = vmul.f32 %v194_v28, %v177_v20  ;;  %v143_v28 = vpop.f32.mrf.mxu0 }
 0x201   :  { %v197_v30 = vpack.c.bf16 %v196_v29, %v196_v29  ;;  %v144_v29 = vadd.f32 %v1111_v3, %v143_v28 }
 0x203   :  { %199 = vrot.lane.b32.xlu1 %v197_v30, %s1035_s1 }
 0x275   :  { %v200_v31 = vpop.permute.xlu1 %199 }
 0x276   :  { %815 = vmatmul.msk.bf16.vlgmr.msra.gmra.mxu1 %vm114_vm0, %v200_v31 }
 0x277   :  { %570 = vmatpush.bf16.msra.mxu1 %v864_v26 }
 0x27b   :  { %571 = vmatpush.bf16.msra.mxu1 %v863_v27 }
 0x2f3   :  { %v225_v34 = vpop.f32.mrf.mxu1 }
 0x2f4   :  { %v229_v35 = vadd.f32 %v225_v34, %v139_v33 }
 0x2f6   :  { %889 = vtanh.f32 %v229_v35  ;;  %v816_v38 = vmul.f32 -1.442695, %v229_v35 }
 0x2f8   :  { %891 = vpow2.f32 %v816_v38 }
 0x2fb   :  { %v227_v36 = vpop.f32.mrf.mxu1 }
 0x2fc   :  { %v890_v37 = vpop.eup %889 }
 0x2fd   :  { %252 = vrot.lane.b32.xlu2 %v890_v37, %s1032_s17 }
 0x2fe   :  { %v892_v39 = vpop.eup %891 }
 0x2ff   :  { %v233_v40 = vadd.f32 1.0, %v892_v39 }
 0x301   :  { %893 = vrcp.f32 %v233_v40  ;;  %v245_v46 = vand.u32 2147483648, %v233_v40  ;;  %vm239_vm6 = vweird.f32 %v233_v40  ;;  %v243_v47 = vand.u32 2147483647, %v233_v40 }
 0x303   :  { %v246_v49 = vor.u32 1.1754944e-38, %v245_v46  ;;  %vm244_vm8 = vcmp.eq.f32.partialorder %v243_v47, 8.507059e+37 }
 0x307   :  { %v894_v41 = vpop.eup %893 }
 0x308   :  { %v235_v42 = vmul.f32 %v894_v41, %v233_v40  ;;  %vm240_vm5 = vweird.f32 %v894_v41 }
 0x309   :  { %vm241_vm7 = vmor %vm239_vm6, %vm240_vm5 }
 0x30a   :  { %v236_v43 = vsub.f32 1.0, %v235_v42 }
 0x30c   :  { %v237_v44 = vmul.f32 %v894_v41, %v236_v43 }
 0x30e   :  { %v238_v45 = vadd.f32 %v894_v41, %v237_v44 }
 0x310   :  { %v242_v48 = vsel %vm241_vm7, %v894_v41, %v238_v45 }
 0x311   :  { %v247_v51 = vsel %vm244_vm8, %v246_v49, %v242_v48 }
 0x312   :  { %v250_v53 = vmul.f32 %v247_v51, %v190_v24 }
 0x357   :  { %v253_v50 = vpop.permute.xlu2 %252 }
 0x358   :  { %v255_v52 = vmul.f32 %v253_v50, %v247_v51 }
 0x35a   :  { %257 = vrot.lane.b32.xlu2 %v255_v52, %s1035_s1 }
 0x3b4   :  { %v258_v54 = vpop.permute.xlu2 %257 }
 0x3b5   :  { %v260_v55 = vadd.f32 %v258_v54, %v250_v53  ;;  %v859_v53 = vld [vmem:[%s1205_s0 + $0x10] sm:$0xff] }
 0x3b6   :  { %804 = vmatmul.msk.bf16.gmra.mxu0 %vm114_vm0, %v859_v53 }
 0x3b7   :  { %895 = vtanh.f32 %v260_v55 }
 0x3bd   :  { %v896_v56 = vpop.eup %895 }
 0x3be   :  { %263 = vrot.lane.b32.xlu0 %v896_v56, %s1032_s17 }
 0x430   :  { %v264_v58 = vpop.permute.xlu0 %263 }
 0x431   :  { %v266_v59 = vmul.f32 %v264_v58, %v247_v51 }
 0x433   :  { %v267_v60 = vpack.c.bf16 %v266_v59, %v266_v59  ;;  %v146_v58 = vpop.f32.mrf.mxu0 }
 0x434   :  { %v147_v59 = vadd.f32 %v1111_v3, %v146_v58 }
 0x435   :  { %269 = vrot.lane.b32.xlu1 %v267_v60, %s1035_s1 }
 0x4a7   :  { %v270_v61 = vpop.permute.xlu1 %269 }
 0x4a8   :  { %817 = vmatmul.msk.bf16.vlgmr.msra.gmra.mxu2 %vm114_vm0, %v270_v61 }
 0x52b   :  { %v283_v0 = vpop.f32.mrf.mxu2 }
 0x52c   :  { %v287_v1 = vadd.f32 %v283_v0, %v142_v63 }
 0x52e   :  { %897 = vtanh.f32 %v287_v1  ;;  %v818_v5 = vmul.f32 -1.442695, %v287_v1 }
 0x530   :  { %899 = vpow2.f32 %v818_v5 }
 0x533   :  { %v285_v2 = vpop.f32.mrf.mxu2 }
 0x534   :  { %v898_v4 = vpop.eup %897 }
 0x535   :  { %310 = vrot.lane.b32.xlu2 %v898_v4, %s1032_s17 }
 0x536   :  { %v900_v6 = vpop.eup %899 }
 0x537   :  { %v291_v7 = vadd.f32 1.0, %v900_v6 }
 0x539   :  { %901 = vrcp.f32 %v291_v7  ;;  %v303_v13 = vand.u32 2147483648, %v291_v7  ;;  %vm297_vm10 = vweird.f32 %v291_v7  ;;  %v301_v14 = vand.u32 2147483647, %v291_v7 }
 0x53b   :  { %v304_v16 = vor.u32 1.1754944e-38, %v303_v13  ;;  %vm302_vm12 = vcmp.eq.f32.partialorder %v301_v14, 8.507059e+37 }
 0x53f   :  { %v902_v8 = vpop.eup %901 }
 0x540   :  { %v293_v9 = vmul.f32 %v902_v8, %v291_v7  ;;  %vm298_vm9 = vweird.f32 %v902_v8 }
 0x541   :  { %vm299_vm11 = vmor %vm297_vm10, %vm298_vm9 }
 0x542   :  { %v294_v10 = vsub.f32 1.0, %v293_v9 }
 0x544   :  { %v295_v11 = vmul.f32 %v902_v8, %v294_v10 }
 0x546   :  { %v296_v12 = vadd.f32 %v902_v8, %v295_v11 }
 0x548   :  { %v300_v15 = vsel %vm299_vm11, %v902_v8, %v296_v12 }
 0x549   :  { %v305_v18 = vsel %vm302_vm12, %v304_v16, %v300_v15 }
 0x54a   :  { %v308_v20 = vmul.f32 %v305_v18, %v260_v55 }
 0x58f   :  { %v311_v17 = vpop.permute.xlu2 %310 }
 0x590   :  { %v313_v19 = vmul.f32 %v311_v17, %v305_v18 }
 0x592   :  { %315 = vrot.lane.b32.xlu0 %v313_v19, %s1035_s1 }
 0x604   :  { %v316_v21 = vpop.permute.xlu0 %315 }
 0x605   :  { %v318_v22 = vadd.f32 %v316_v21, %v308_v20 }
 0x607   :  { %903 = vtanh.f32 %v318_v22 }
 0x60d   :  { %v904_v23 = vpop.eup %903 }
 0x60e   :  { %321 = vrot.lane.b32.xlu1 %v904_v23, %s1032_s17 }
 0x680   :  { %v322_v24 = vpop.permute.xlu1 %321 }
 0x681   :  { %v324_v25 = vmul.f32 %v322_v24, %v305_v18  ;;  %v148_v24 = vpop.f32.mrf.mxu0 }
 0x683   :  { %v325_v26 = vpack.c.bf16 %v324_v25, %v324_v25  ;;  %v149_v25 = vadd.f32 %v1111_v3, %v148_v24 }
 0x685   :  { %327 = vrot.lane.b32.xlu2 %v325_v26, %s1035_s1 }
 0x6df   :  { %v328_v27 = vpop.permute.xlu2 %327 }
 0x6e0   :  { %819 = vmatmul.msk.bf16.vlgmr.msra.gmra.mxu3 %vm114_vm0, %v328_v27 }
 0x763   :  { %v341_v30 = vpop.f32.mrf.mxu3 }
 0x764   :  { %v345_v31 = vadd.f32 %v341_v30, %v144_v29 }
 0x766   :  { %905 = vtanh.f32 %v345_v31  ;;  %v820_v34 = vmul.f32 -1.442695, %v345_v31 }
 0x768   :  { %907 = vpow2.f32 %v820_v34 }
 0x76b   :  { %v343_v32 = vpop.f32.mrf.mxu3 }
 0x76c   :  { %v906_v33 = vpop.eup %905 }
 0x76d   :  { %368 = vrot.lane.b32.xlu0 %v906_v33, %s1032_s17 }
 0x76e   :  { %v908_v35 = vpop.eup %907 }
 0x76f   :  { %v349_v36 = vadd.f32 1.0, %v908_v35 }
 0x771   :  { %909 = vrcp.f32 %v349_v36  ;;  %v361_v42 = vand.u32 2147483648, %v349_v36  ;;  %vm355_vm14 = vweird.f32 %v349_v36  ;;  %v359_v43 = vand.u32 2147483647, %v349_v36 }
 0x773   :  { %v362_v45 = vor.u32 1.1754944e-38, %v361_v42  ;;  %vm360_vm1 = vcmp.eq.f32.partialorder %v359_v43, 8.507059e+37 }
 0x777   :  { %v910_v37 = vpop.eup %909 }
 0x778   :  { %v351_v38 = vmul.f32 %v910_v37, %v349_v36  ;;  %vm356_vm13 = vweird.f32 %v910_v37 }
 0x779   :  { %vm357_vm15 = vmor %vm355_vm14, %vm356_vm13 }
 0x77a   :  { %v352_v39 = vsub.f32 1.0, %v351_v38 }
 0x77c   :  { %v353_v40 = vmul.f32 %v910_v37, %v352_v39 }
 0x77e   :  { %v354_v41 = vadd.f32 %v910_v37, %v353_v40 }
 0x780   :  { %v358_v44 = vsel %vm357_vm15, %v910_v37, %v354_v41 }
 0x781   :  { %v363_v47 = vsel %vm360_vm1, %v362_v45, %v358_v44 }
 0x782   :  { %v366_v49 = vmul.f32 %v363_v47, %v318_v22 }
 0x7df   :  { %v369_v46 = vpop.permute.xlu0 %368 }
 0x7e0   :  { %v371_v48 = vmul.f32 %v369_v46, %v363_v47 }
 0x7e2   :  { %373 = vrot.lane.b32.xlu1 %v371_v48, %s1035_s1 }
 0x854   :  { %v374_v50 = vpop.permute.xlu1 %373 }
 0x855   :  { %v376_v51 = vadd.f32 %v374_v50, %v366_v49  ;;  %v860_v49 = vld [vmem:[%s1205_s0 + $0x18] sm:$0xff] }
 0x856   :  { %805 = vmatmul.msk.bf16.gmra.mxu0 %vm114_vm0, %v860_v49 }
 0x857   :  { %911 = vtanh.f32 %v376_v51 }
 0x85d   :  { %v912_v52 = vpop.eup %911 }
 0x85e   :  { %379 = vrot.lane.b32.xlu2 %v912_v52, %s1032_s17 }
 0x8b8   :  { %v380_v54 = vpop.permute.xlu2 %379 }
 0x8b9   :  { %v382_v55 = vmul.f32 %v380_v54, %v363_v47 }
 0x8bb   :  { %v383_v56 = vpack.c.bf16 %v382_v55, %v382_v55 }
 0x8bd   :  { %385 = vrot.lane.b32.xlu0 %v383_v56, %s1035_s1 }
 0x8d3   :  { %v151_v54 = vpop.f32.mrf.mxu0 }
 0x8d4   :  { %v152_v55 = vadd.f32 %v1111_v3, %v151_v54 }
 0x92f   :  { %v386_v57 = vpop.permute.xlu0 %385 }
 0x930   :  { %821 = vmatmul.msk.bf16.vlgmr.msrb.gmra.mxu1 %vm114_vm0, %v386_v57 }
 0x9ad   :  { %v399_v60 = vpop.f32.mrf.mxu1 }
 0x9ae   :  { %v403_v61 = vadd.f32 %v399_v60, %v147_v59 }
 0x9b0   :  { %913 = vtanh.f32 %v403_v61  ;;  %v822_v0 = vmul.f32 -1.442695, %v403_v61 }
 0x9b2   :  { %915 = vpow2.f32 %v822_v0 }
 0x9b5   :  { %v401_v62 = vpop.f32.mrf.mxu1 }
 0x9b6   :  { %v914_v63 = vpop.eup %913 }
 0x9b7   :  { %426 = vrot.lane.b32.xlu1 %v914_v63, %s1032_s17 }
 0x9b8   :  { %v916_v1 = vpop.eup %915 }
 0x9b9   :  { %v407_v2 = vadd.f32 1.0, %v916_v1 }
 0x9bb   :  { %917 = vrcp.f32 %v407_v2  ;;  %v419_v9 = vand.u32 2147483648, %v407_v2  ;;  %vm413_vm3 = vweird.f32 %v407_v2  ;;  %v417_v10 = vand.u32 2147483647, %v407_v2 }
 0x9bd   :  { %v420_v12 = vor.u32 1.1754944e-38, %v419_v9  ;;  %vm418_vm5 = vcmp.eq.f32.partialorder %v417_v10, 8.507059e+37 }
 0x9c1   :  { %v918_v4 = vpop.eup %917 }
 0x9c2   :  { %v409_v5 = vmul.f32 %v918_v4, %v407_v2  ;;  %vm414_vm2 = vweird.f32 %v918_v4 }
 0x9c3   :  { %vm415_vm4 = vmor %vm413_vm3, %vm414_vm2 }
 0x9c4   :  { %v410_v6 = vsub.f32 1.0, %v409_v5 }
 0x9c6   :  { %v411_v7 = vmul.f32 %v918_v4, %v410_v6 }
 0x9c8   :  { %v412_v8 = vadd.f32 %v918_v4, %v411_v7 }
 0x9ca   :  { %v416_v11 = vsel %vm415_vm4, %v918_v4, %v412_v8 }
 0x9cb   :  { %v421_v14 = vsel %vm418_vm5, %v420_v12, %v416_v11 }
 0x9cc   :  { %v424_v16 = vmul.f32 %v421_v14, %v376_v51 }
 0xa29   :  { %v427_v13 = vpop.permute.xlu1 %426 }
 0xa2a   :  { %v429_v15 = vmul.f32 %v427_v13, %v421_v14 }
 0xa2c   :  { %431 = vrot.lane.b32.xlu2 %v429_v15, %s1035_s1 }
 0xa86   :  { %v432_v17 = vpop.permute.xlu2 %431 }
 0xa87   :  { %v434_v18 = vadd.f32 %v432_v17, %v424_v16  ;;  %v866_v16 = vld [vmem:[%s1209_s4 + $0x8] sm:$0xff]  ;;  %v865_v17 = vld [vmem:[%s1209_s4] sm:$0xff] }
 0xa88   :  { %644 = vmatpush.bf16.msra.mxu2 %v866_v16  ;;  %v867_v16 = vld [vmem:[#allocation2] sm:$0xff] }
 0xa89   :  { %919 = vtanh.f32 %v434_v18 }
 0xa8c   :  { %645 = vmatpush.bf16.msra.mxu2 %v865_v17 }
 0xa8f   :  { %v920_v19 = vpop.eup %919 }
 0xa90   :  { %437 = vrot.lane.b32.xlu0 %v920_v19, %s1032_s17 }
 0xb02   :  { %v438_v20 = vpop.permute.xlu0 %437 }
 0xb03   :  { %v440_v21 = vmul.f32 %v438_v20, %v421_v14 }
 0xb05   :  { %v441_v22 = vpack.c.bf16 %v440_v21, %v440_v21 }
 0xb07   :  { %443 = vrot.lane.b32.xlu1 %v441_v22, %s1035_s1  ;;  %v879_v22 = vld [vmem:[%s1210_s5] ss:$0 sm:$0xff] }
 0xb79   :  { %v444_v23 = vpop.permute.xlu1 %443 }
 0xb7a   :  { %823 = vmatmul.msk.bf16.vlgmr.msrb.gmra.mxu2 %vm114_vm0, %v444_v23 }
 0xbfd   :  { %v457_v26 = vpop.f32.mrf.mxu2 }
 0xbfe   :  { %v461_v27 = vadd.f32 %v457_v26, %v149_v25 }
 0xc00   :  { %921 = vtanh.f32 %v461_v27  ;;  %v824_v30 = vmul.f32 -1.442695, %v461_v27 }
 0xc02   :  { %923 = vpow2.f32 %v824_v30 }
 0xc05   :  { %v459_v28 = vpop.f32.mrf.mxu2 }
 0xc06   :  { %v922_v29 = vpop.eup %921 }
 0xc07   :  { %484 = vrot.lane.b32.xlu2 %v922_v29, %s1032_s17 }
 0xc08   :  { %v924_v31 = vpop.eup %923 }
 0xc09   :  { %v465_v32 = vadd.f32 1.0, %v924_v31 }
 0xc0b   :  { %925 = vrcp.f32 %v465_v32  ;;  %v477_v38 = vand.u32 2147483648, %v465_v32  ;;  %vm471_vm7 = vweird.f32 %v465_v32  ;;  %v475_v39 = vand.u32 2147483647, %v465_v32 }
 0xc0d   :  { %v478_v41 = vor.u32 1.1754944e-38, %v477_v38  ;;  %vm476_vm9 = vcmp.eq.f32.partialorder %v475_v39, 8.507059e+37  ;;  %v153_v38 = vpop.f32.mrf.mxu0 }
 0xc11   :  { %v926_v33 = vpop.eup %925 }
 0xc12   :  { %v467_v34 = vmul.f32 %v926_v33, %v465_v32  ;;  %vm472_vm6 = vweird.f32 %v926_v33 }
 0xc13   :  { %vm473_vm8 = vmor %vm471_vm7, %vm472_vm6 }
 0xc14   :  { %v468_v35 = vsub.f32 1.0, %v467_v34 }
 0xc16   :  { %v469_v36 = vmul.f32 %v926_v33, %v468_v35 }
 0xc18   :  { %v470_v37 = vadd.f32 %v926_v33, %v469_v36 }
 0xc1a   :  { %v474_v40 = vsel %vm473_vm8, %v926_v33, %v470_v37 }
 0xc1b   :  { %v479_v43 = vsel %vm476_vm9, %v478_v41, %v474_v40  ;;  %v154_v40 = vadd.f32 %v1111_v3, %v153_v38 }
 0xc1c   :  { %v482_v45 = vmul.f32 %v479_v43, %v434_v18  ;;  %v73_v18 = vld [vmem:[%s1205_s0 + $0x1c] sm:$0xf]  ;;  %s1036_s0 = smov 96  }
 0xc1d   :  { %837 = vmatmul.msk.bf16.vlgmr.msra.gmra.mxu2 %vm114_vm0, %v73_v18 }
 0xc61   :  { %v485_v42 = vpop.permute.xlu2 %484 }
 0xc62   :  { %v487_v44 = vmul.f32 %v485_v42, %v479_v43 }
 0xc64   :  { %489 = vrot.lane.b32.xlu0 %v487_v44, %s1035_s1 }
 0xca0   :  { %v647_v23 = vpop.f32.mrf.mxu2 }
 0xca1   :  { %v648_v24 = vadd.f32 %v879_v22, %v647_v23 }
 0xca3   :  { %v838_v28 = vmul.f32 -1.442695, %v648_v24 }
 0xca8   :  { %v649_v26 = vpop.f32.mrf.mxu2 }
 0xcd6   :  { %v490_v46 = vpop.permute.xlu0 %489 }
 0xcd7   :  { %v492_v47 = vadd.f32 %v490_v46, %v482_v45 }
 0xcd9   :  { %927 = vtanh.f32 %v492_v47 }
 0xcdf   :  { %v928_v48 = vpop.eup %927 }
 0xce0   :  { %495 = vrot.lane.b32.xlu1 %v928_v48, %s1032_s17 }
 0xd52   :  { %v496_v50 = vpop.permute.xlu1 %495 }
 0xd53   :  { %v498_v51 = vmul.f32 %v496_v50, %v479_v43 }
 0xd55   :  { %v499_v52 = vpack.c.bf16 %v498_v51, %v498_v51 }
 0xd57   :  { %501 = vrot.lane.b32.xlu2 %v499_v52, %s1035_s1 }
 0xdb1   :  { %v502_v53 = vpop.permute.xlu2 %501 }
 0xdb2   :  { %825 = vmatmul.msk.bf16.vlgmr.msrb.gmra.mxu3 %vm114_vm0, %v502_v53 }
 0xe35   :  { %v515_v56 = vpop.f32.mrf.mxu3 }
 0xe36   :  { %v519_v57 = vadd.f32 %v515_v56, %v152_v55 }
 0xe38   :  { %929 = vtanh.f32 %v519_v57  ;;  %v826_v60 = vmul.f32 -1.442695, %v519_v57 }
 0xe3a   :  { %931 = vpow2.f32 %v826_v60 }
 0xe3d   :  { %v517_v58 = vpop.f32.mrf.mxu3 }
 0xe3e   :  { %v930_v59 = vpop.eup %929 }
 0xe3f   :  { %542 = vrot.lane.b32.xlu0 %v930_v59, %s1032_s17 }
 0xe40   :  { %v932_v61 = vpop.eup %931 }
 0xe41   :  { %v523_v62 = vadd.f32 1.0, %v932_v61 }
 0xe43   :  { %933 = vrcp.f32 %v523_v62  ;;  %v535_v5 = vand.u32 2147483648, %v523_v62  ;;  %vm529_vm11 = vweird.f32 %v523_v62  ;;  %v533_v6 = vand.u32 2147483647, %v523_v62 }
 0xe45   :  { %v536_v8 = vor.u32 1.1754944e-38, %v535_v5  ;;  %vm534_vm13 = vcmp.eq.f32.partialorder %v533_v6, 8.507059e+37  ;;  %v869_v5 = vld [vmem:[#allocation5] sm:$0xff] }
 0xe49   :  { %v934_v63 = vpop.eup %933 }
 0xe4a   :  { %v525_v0 = vmul.f32 %v934_v63, %v523_v62  ;;  %vm530_vm10 = vweird.f32 %v934_v63 }
 0xe4b   :  { %vm531_vm12 = vmor %vm529_vm11, %vm530_vm10 }
 0xe4c   :  { %v526_v1 = vsub.f32 1.0, %v525_v0 }
 0xe4e   :  { %v527_v2 = vmul.f32 %v934_v63, %v526_v1 }
 0xe50   :  { %v528_v4 = vadd.f32 %v934_v63, %v527_v2 }
 0xe52   :  { %v532_v7 = vsel %vm531_vm12, %v934_v63, %v528_v4  ;;  %v870_v4 = vld [vmem:[#allocation5 + $0x8] sm:$0xff] }
 0xe53   :  { %v537_v10 = vsel %vm534_vm13, %v536_v8, %v532_v7  ;;  %716 = vmatpush.bf16.msra.mxu3 %v870_v4 }
 0xe54   :  { %v540_v12 = vmul.f32 %v537_v10, %v492_v47 }
 0xe57   :  { %717 = vmatpush.bf16.msra.mxu3 %v869_v5 }
 0xeb1   :  { %v543_v9 = vpop.permute.xlu0 %542 }
 0xeb2   :  { %v545_v11 = vmul.f32 %v543_v9, %v537_v10 }
 0xeb4   :  { %547 = vrot.lane.b32.xlu1 %v545_v11, %s1035_s1 }
 0xf26   :  { %v548_v13 = vpop.permute.xlu1 %547 }
 0xf27   :  { %v1170_v14 = vadd.f32 %v548_v13, %v540_v12 }
 0xf29   :  { %935 = vtanh.f32 %v1170_v14 }
 0xf2a   :  { %937 = vtanh.f32 %v648_v24 }
 0xf2b   :  { %939 = vpow2.f32 %v838_v28 }
 0xf2f   :  { %v936_v15 = vpop.eup %935 }
 0xf30   :  { %553 = vrot.lane.b32.xlu2 %v936_v15, %s1032_s17  ;;  %v938_v27 = vpop.eup %937  ;;  %v868_v15 = vld [vmem:[#allocation2 + $0x8] sm:$0xff] }
 0xf31   :  { %v940_v29 = vpop.eup %939  ;;  %747 = vmatpush.bf16.msrb.mxu1 %v868_v15 }
 0xf32   :  { %v654_v30 = vadd.f32 1.0, %v940_v29 }
 0xf34   :  { %941 = vrcp.f32 %v654_v30  ;;  %vm660_vm14 = vweird.f32 %v654_v30  ;;  %v666_v35 = vand.u32 2147483648, %v654_v30  ;;  %v664_v37 = vand.u32 2147483647, %v654_v30 }
 0xf35   :  { %748 = vmatpush.bf16.msrb.mxu1 %v867_v16 }
 0xf36   :  { %v667_v39 = vor.u32 1.1754944e-38, %v666_v35  ;;  %vm665_vm2 = vcmp.eq.f32.partialorder %v664_v37, 8.507059e+37 }
 0xf38   :  { %672 = vrot.lane.b32.xlu2 %v938_v27, %s1032_s17 }
 0xf3a   :  { %v942_v31 = vpop.eup %941 }
 0xf3b   :  { %v656_v32 = vmul.f32 %v942_v31, %v654_v30  ;;  %vm661_vm15 = vweird.f32 %v942_v31 }
 0xf3c   :  { %vm662_vm1 = vmor %vm660_vm14, %vm661_vm15 }
 0xf3d   :  { %v657_v33 = vsub.f32 1.0, %v656_v32 }
 0xf3f   :  { %v658_v34 = vmul.f32 %v942_v31, %v657_v33 }
 0xf41   :  { %v659_v36 = vadd.f32 %v942_v31, %v658_v34 }
 0xf43   :  { %v663_v41 = vsel %vm662_vm1, %v942_v31, %v659_v36 }
 0xf44   :  { %v668_v45 = vsel %vm665_vm2, %v667_v39, %v663_v41 }
 0xf8a   :  { %v554_v19 = vpop.permute.xlu2 %553 }
 0xf8b   :  { %v556_v20 = vmul.f32 %v554_v19, %v537_v10  ;;  %v880_v19 = vld [vmem:[%s1213_s8] ss:$0 sm:$0xff] }
 0xf8d   :  { %v557_v21 = vpack.c.bf16 %v556_v20, %v556_v20 }
 0xf8f   :  { %559 = vrot.lane.b32.xlu0 %v557_v21, %s1035_s1 }
 0xf92   :  { %v673_v44 = vpop.permute.xlu2 %672 }
 0xf93   :  { %v675_v46 = vmul.f32 %v673_v44, %v668_v45 }
0x1001   :  { %v560_v25 = vpop.permute.xlu0 %559 }
0x1002   :  { %827 = vmatmul.msk.bf16.vlgmr.msra.gmra.mxu1 %vm114_vm0, %v560_v25 }
0x107f   :  { %v573_v42 = vpop.f32.mrf.mxu1 }
0x1080   :  { %v577_v43 = vadd.f32 %v573_v42, %v154_v40 }
0x1082   :  { %943 = vtanh.f32 %v577_v43  ;;  %v828_v50 = vmul.f32 -1.442695, %v577_v43 }
0x1083   :  { %945 = vtanh.f32 %v675_v46 }
0x1084   :  { %947 = vpow2.f32 %v828_v50 }
0x1087   :  { %v575_v47 = vpop.f32.mrf.mxu1 }
0x1088   :  { %v944_v48 = vpop.eup %943 }
0x1089   :  { %600 = vrot.lane.b32.xlu1 %v944_v48, %s1032_s17  ;;  %v946_v49 = vpop.eup %945 }
0x108a   :  { %v948_v51 = vpop.eup %947 }
0x108b   :  { %v581_v3 = vadd.f32 1.0, %v948_v51 }
0x108d   :  { %949 = vrcp.f32 %v581_v3  ;;  %v593_v57 = vand.u32 2147483648, %v581_v3  ;;  %vm587_vm4 = vweird.f32 %v581_v3  ;;  %v591_v58 = vand.u32 2147483647, %v581_v3 }
0x108f   :  { %v594_v60 = vor.u32 1.1754944e-38, %v593_v57  ;;  %vm592_vm6 = vcmp.eq.f32.partialorder %v591_v58, 8.507059e+37 }
0x1091   :  { %678 = vrot.lane.b32.xlu1 %v946_v49, %s1036_s0 }
0x1093   :  { %v950_v52 = vpop.eup %949 }
0x1094   :  { %v583_v53 = vmul.f32 %v950_v52, %v581_v3  ;;  %vm588_vm3 = vweird.f32 %v950_v52 }
0x1095   :  { %vm589_vm5 = vmor %vm587_vm4, %vm588_vm3 }
0x1096   :  { %v584_v54 = vsub.f32 1.0, %v583_v53 }
0x1098   :  { %v585_v55 = vmul.f32 %v950_v52, %v584_v54 }
0x109a   :  { %v586_v56 = vadd.f32 %v950_v52, %v585_v55 }
0x109c   :  { %v590_v59 = vsel %vm589_vm5, %v950_v52, %v586_v56 }
0x109d   :  { %v595_v62 = vsel %vm592_vm6, %v594_v60, %v590_v59 }
0x109e   :  { %v598_v6 = vmul.f32 %v595_v62, %v1170_v14 }
0x10fb   :  { %v601_v61 = vpop.permute.xlu1 %600 }
0x10fc   :  { %v603_v63 = vmul.f32 %v601_v61, %v595_v62 }
0x10fe   :  { %605 = vrot.lane.b32.xlu0 %v603_v63, %s1035_s1 }
0x1103   :  { %v679_v0 = vpop.permute.xlu1 %678 }
0x1104   :  { %v681_v1 = vmul.f32 %v679_v0, %v668_v45 }
0x1106   :  { %v687_v2 = vpack.c.bf16 %v681_v1, %v681_v1 }
0x1108   :  { %693 = vrot.lane.b32.xlu0 %v687_v2, %s1035_s1 }
0x1170   :  { %v606_v7 = vpop.permute.xlu0 %605 }
0x1171   :  { %v608_v8 = vadd.f32 %v606_v7, %v598_v6 }
0x1173   :  { %951 = vtanh.f32 %v608_v8 }
0x1179   :  { %v952_v9 = vpop.eup %951 }
0x117a   :  { %v694_v10 = vpop.permute.xlu0 %693  ;;  %611 = vrot.lane.b32.xlu2 %v952_v9, %s1032_s17  ;;  %s1037_s17 = smov [#allocation7]  }
0x117b   :  { %847 = vmatmul.msk.bf16.vlgmr.msra.gmra.mxu3 %vm114_vm0, %v694_v10  ;;  %s765_s7 = sshll.u32 %s1037_s17, 4  ;;  %s766_s7 = int_to_ptr.vmem [resolvable:$true] %s765_s7 }
0x11d4   :  { %v612_v11 = vpop.permute.xlu2 %611 }
0x11d5   :  { %v614_v12 = vmul.f32 %v612_v11, %v595_v62 }
0x11d7   :  { %v682_v13 = vpack.c.bf16 %v614_v12, %v614_v12 }
0x11d9   :  { %724 = vrot.lane.b32.xlu1 %v682_v13, %s1035_s1 }
0x11fe   :  { %v719_v17 = vpop.f32.mrf.mxu3 }
0x1206   :  { %v721_v14 = vpop.f32.mrf.mxu3 }
0x124b   :  { %v725_v18 = vpop.permute.xlu1 %724 }
0x124c   :  { %856 = vmatmul.msk.bf16.vlgmr.msrb.gmra.mxu1 %vm114_vm0, %v725_v18 }
0x12c9   :  { %v750_v20 = vpop.f32.mrf.mxu1 }
0x12ca   :  { %v751_v21 = vadd.f32 %v750_v20, %v719_v17 }
0x12cc   :  { %v758_v22 = vadd.f32 %v880_v19, %v751_v21 }
0x12ce   :  { %759 = vst [vmem:[#allocation7] sm:$0xff] %v758_v22 }
0x12cf   :  { %770 = dma.vmem_to_hbm [thread:$0]  %s766_s7, 128, %s768_s24, [#allocation4]  }
0x12d1   :  { %v752_v23 = vpop.f32.mrf.mxu1 }
0x12d2   :  { %1029 = dma.done.wait [#allocation4], 128  }
0x12d3   :  { %1030 = vsyncadd [#allocation4], 4294967168 }
0x12d4   :  { %775 = vsyncpa [#allocation3], 1 }
0x12d5   :  { %776 = vsyncpa [#allocation6], 1 }
0x12d6   :  { %777 = vsyncpa [#allocation4], 1 }

</bundles_post_ra>
